<compile_context>
chip_gen: v6e
topology: v6e:2x2x1
jax: 0.10.0
libtpu: 0.0.40
codegen_flags: <defaults>
</compile_context>

<pallas_src>
import functools
import math

import jax
import jax.numpy as jnp
from jax.experimental import pallas as pl
from jax.experimental.pallas import tpu as pltpu


def _round_up(n, m):
    return (n + m - 1) // m * m


# ---------------------------------------------------------------------------
# Fused forward kernel: x, eps, all weights/biases in -> recon, mu, logvar out
# ---------------------------------------------------------------------------
def _vae_fused_kernel(*refs, n_enc, n_dec, latent_pad):
    idx = 0
    x_ref = refs[idx]; idx += 1
    eps_ref = refs[idx]; idx += 1
    enc = []
    for _ in range(n_enc):
        enc.append((refs[idx], refs[idx + 1])); idx += 2
    wh_ref, bh_ref = refs[idx], refs[idx + 1]; idx += 2
    dec = []
    for _ in range(n_dec):
        dec.append((refs[idx], refs[idx + 1])); idx += 2
    recon_ref, mu_ref, logvar_ref = refs[idx], refs[idx + 1], refs[idx + 2]

    # --- encoder prefix: Linear + ReLU, activations stay on-chip -----------
    h = x_ref[...]
    for w_ref, b_ref in enc:
        y = jnp.dot(h.astype(w_ref.dtype), w_ref[...],
                    preferred_element_type=jnp.float32) + b_ref[...]
        h = jnp.maximum(y, 0.0)

    # --- fused mu|logvar head: one matmul over shared h, lane-aligned split -
    ml = jnp.dot(h.astype(wh_ref.dtype), wh_ref[...],
                 preferred_element_type=jnp.float32) + bh_ref[...]
    mu = ml[:, :latent_pad]
    logvar = ml[:, latent_pad:]

    # --- reparametrize: z = eps * exp(0.5*logvar) + mu (f32, EUP exp) -------
    z = eps_ref[...] * jnp.exp(0.5 * logvar) + mu

    # --- decoder: Linear+ReLU ... Linear+Sigmoid ----------------------------
    d = z
    for i, (w_ref, b_ref) in enumerate(dec):
        y = jnp.dot(d.astype(w_ref.dtype), w_ref[...],
                    preferred_element_type=jnp.float32) + b_ref[...]
        d = jax.nn.sigmoid(y) if i == n_dec - 1 else jnp.maximum(y, 0.0)

    recon_ref[...] = d.astype(recon_ref.dtype)
    mu_ref[...] = mu.astype(mu_ref.dtype)
    logvar_ref[...] = logvar.astype(logvar_ref.dtype)


# ---------------------------------------------------------------------------
# Parameter construction (mimics torch.nn.Linear default init, zero-padded to
# lane/sublane-friendly shapes; weights stored pre-transposed as (in, out))
# ---------------------------------------------------------------------------
def init_linear(key, fan_in, fan_out, in_pad, out_pad, weight_dtype):
    kw, kb = jax.random.split(key)
    bound = 1.0 / math.sqrt(fan_in)
    w = jax.random.uniform(kw, (fan_in, fan_out), jnp.float32, -bound, bound)
    b = jax.random.uniform(kb, (fan_out,), jnp.float32, -bound, bound)
    w_p = jnp.zeros((in_pad, out_pad), jnp.float32).at[:fan_in, :fan_out].set(w)
    b_p = jnp.zeros((1, out_pad), jnp.float32).at[0, :fan_out].set(b)
    return w_p.astype(weight_dtype), b_p  # bias stays f32


def init_voice_vae(key, structure, weight_dtype=jnp.bfloat16):
    """structure like [6000, 2000, 500, 100] (here scaled down)."""
    pad = [_round_up(d, 128) for d in structure]
    params = {
        "structure": list(structure),
        "d0": structure[0], "d0_pad": pad[0],
        "latent": structure[-1], "latent_pad": pad[-1],
        "enc_prefix": [], "dec": [],
    }
    n_layers = (len(structure) - 2) + 2 + (len(structure) - 1)
    keys = jax.random.split(key, n_layers)
    k = 0
    # encoder prefix: Linear+ReLU for i in 1..len-2
    for i in range(1, len(structure) - 1):
        params["enc_prefix"].append(
            init_linear(keys[k], structure[i - 1], structure[i],
                        pad[i - 1], pad[i], weight_dtype))
        k += 1
    # mu / sigma heads, fused along the output axis: (in_pad, 2*latent_pad)
    wm, bm = init_linear(keys[k], structure[-2], structure[-1],
                         pad[-2], pad[-1], weight_dtype); k += 1
    ws, bs = init_linear(keys[k], structure[-2], structure[-1],
                         pad[-2], pad[-1], weight_dtype); k += 1
    params["head"] = (jnp.concatenate([wm, ws], axis=1),
                      jnp.concatenate([bm, bs], axis=1))
    # decoder: reversed structure, Linear+ReLU ... Linear+Sigmoid
    rev, rpad = structure[::-1], pad[::-1]
    for i in range(1, len(rev)):
        params["dec"].append(
            init_linear(keys[k], rev[i - 1], rev[i],
                        rpad[i - 1], rpad[i], weight_dtype))
        k += 1
    return params


# ---------------------------------------------------------------------------
# Forward pass == VoiceVAE.forward(x) -> (recon, mu, logvar)
# ---------------------------------------------------------------------------
def voice_vae_forward(params, x, eps):
    B, D0 = x.shape
    latent = params["latent"]
    Bp = _round_up(B, 8)
    D0p, Lp = params["d0_pad"], params["latent_pad"]

    x_p = jnp.zeros((Bp, D0p), jnp.float32).at[:B, :D0].set(x)
    eps_p = jnp.zeros((Bp, Lp), jnp.float32).at[:B, :latent].set(eps)

    flat_inputs = [x_p, eps_p]
    in_specs = [pl.BlockSpec(x_p.shape, lambda: (0, 0)),
                pl.BlockSpec(eps_p.shape, lambda: (0, 0))]
    for w, b in params["enc_prefix"]:
        flat_inputs += [w, b]
        in_specs += [pl.BlockSpec(w.shape, lambda: (0, 0)),
                     pl.BlockSpec(b.shape, lambda: (0, 0))]
    wh, bh = params["head"]
    flat_inputs += [wh, bh]
    in_specs += [pl.BlockSpec(wh.shape, lambda: (0, 0)),
                 pl.BlockSpec(bh.shape, lambda: (0, 0))]
    for w, b in params["dec"]:
        flat_inputs += [w, b]
        in_specs += [pl.BlockSpec(w.shape, lambda: (0, 0)),
                     pl.BlockSpec(b.shape, lambda: (0, 0))]

    out_shapes = (jax.ShapeDtypeStruct((Bp, D0p), jnp.float32),
                  jax.ShapeDtypeStruct((Bp, Lp), jnp.float32),
                  jax.ShapeDtypeStruct((Bp, Lp), jnp.float32))
    out_specs = (pl.BlockSpec((Bp, D0p), lambda: (0, 0)),
                 pl.BlockSpec((Bp, Lp), lambda: (0, 0)),
                 pl.BlockSpec((Bp, Lp), lambda: (0, 0)))

    kernel = functools.partial(
        _vae_fused_kernel,
        n_enc=len(params["enc_prefix"]),
        n_dec=len(params["dec"]),
        latent_pad=Lp,
    )
    recon_p, mu_p, logvar_p = pl.pallas_call(
        kernel,
        out_shape=out_shapes,
        in_specs=in_specs,
        out_specs=out_specs,
        compiler_params=pltpu.CompilerParams(vmem_limit_bytes=32 * 1024 * 1024),
    )(*flat_inputs)

    return recon_p[:B, :D0], mu_p[:B, :latent], logvar_p[:B, :latent]


# ---------------------------------------------------------------------------
# Pure-JAX reference (same padded bf16 weights / f32 accumulation) for checking
# ---------------------------------------------------------------------------
def voice_vae_reference(params, x, eps):
    B, D0 = x.shape
    latent, Lp = params["latent"], params["latent_pad"]
    D0p = params["d0_pad"]
    h = jnp.zeros((B, D0p), jnp.float32).at[:, :D0].set(x)
    eps_p = jnp.zeros((B, Lp), jnp.float32).at[:, :latent].set(eps)
    for w, b in params["enc_prefix"]:
        h = jnp.maximum(jnp.dot(h.astype(w.dtype), w,
                                preferred_element_type=jnp.float32) + b, 0.0)
    wh, bh = params["head"]
    ml = jnp.dot(h.astype(wh.dtype), wh, preferred_element_type=jnp.float32) + bh
    mu, logvar = ml[:, :Lp], ml[:, Lp:]
    d = eps_p * jnp.exp(0.5 * logvar) + mu
    for i, (w, b) in enumerate(params["dec"]):
        y = jnp.dot(d.astype(w.dtype), w, preferred_element_type=jnp.float32) + b
        d = jax.nn.sigmoid(y) if i == len(params["dec"]) - 1 else jnp.maximum(y, 0.0)
    return d[:, :D0], mu[:, :latent], logvar[:, :latent]


# ---------------------------------------------------------------------------
if __name__ == "__main__":
    # Scaled-down version of the default nn_structure=[6000, 2000, 500, 100]
    structure = [256, 128, 64, 32]
    batch = 8

    root = jax.random.PRNGKey(0)
    k_params, k_x, k_eps = jax.random.split(root, 3)

    params = init_voice_vae(k_params, structure)
    x = jax.random.uniform(k_x, (batch, structure[0]), jnp.float32)
    # eps ~ N(0,1), equivalent to torch.FloatTensor(std.size()).normal_()
    eps = jax.random.normal(k_eps, (batch, structure[-1]), jnp.float32)

    recon, mu, logvar = voice_vae_forward(params, x, eps)
    jax.block_until_ready((recon, mu, logvar))

    assert recon.shape == (batch, structure[0])
    assert mu.shape == (batch, structure[-1])
    assert logvar.shape == (batch, structure[-1])
    assert bool(jnp.all(jnp.isfinite(recon)))
    assert bool(jnp.all((recon >= 0.0) & (recon <= 1.0)))  # sigmoid output range

    # cross-check against plain-JAX reference with identical dtypes
    r_ref, mu_ref, lv_ref = voice_vae_reference(params, x, eps)
    assert bool(jnp.allclose(recon, r_ref, atol=1e-2, rtol=1e-2))
    assert bool(jnp.allclose(mu, mu_ref, atol=1e-2, rtol=1e-2))
    assert bool(jnp.allclose(logvar, lv_ref, atol=1e-2, rtol=1e-2))

    print("KERNEL_OK")
</pallas_src>

<mosaic_0001>
module attributes {stable_mosaic.version = 11 : i64} {
  func.func @_vae_fused_kernel(%arg0: memref<8x256xf32, #tpu.memory_space<vmem>>, %arg1: memref<8x128xf32, #tpu.memory_space<vmem>>, %arg2: memref<256x128xbf16, #tpu.memory_space<vmem>>, %arg3: memref<1x128xf32, #tpu.memory_space<vmem>>, %arg4: memref<128x128xbf16, #tpu.memory_space<vmem>>, %arg5: memref<1x128xf32, #tpu.memory_space<vmem>>, %arg6: memref<128x256xbf16, #tpu.memory_space<vmem>>, %arg7: memref<1x256xf32, #tpu.memory_space<vmem>>, %arg8: memref<128x128xbf16, #tpu.memory_space<vmem>>, %arg9: memref<1x128xf32, #tpu.memory_space<vmem>>, %arg10: memref<128x128xbf16, #tpu.memory_space<vmem>>, %arg11: memref<1x128xf32, #tpu.memory_space<vmem>>, %arg12: memref<128x256xbf16, #tpu.memory_space<vmem>>, %arg13: memref<1x256xf32, #tpu.memory_space<vmem>>, %arg14: memref<8x256xf32, #tpu.memory_space<vmem>>, %arg15: memref<8x128xf32, #tpu.memory_space<vmem>>, %arg16: memref<8x128xf32, #tpu.memory_space<vmem>>) attributes {dimension_semantics = [], scalar_prefetch = 0 : i64, scratch_operands = 0 : i64, tpu.core_type = #tpu.core_type<tc>} {
    %c0 = arith.constant 0 : index
    %c0_0 = arith.constant 0 : index
    %0 = vector.load %arg0[%c0, %c0_0] : memref<8x256xf32, #tpu.memory_space<vmem>>, vector<8x256xf32>
    %1 = arith.truncf %0 : vector<8x256xf32> to vector<8x256xbf16>
    %c0_1 = arith.constant 0 : index
    %c0_2 = arith.constant 0 : index
    %2 = vector.load %arg2[%c0_1, %c0_2] : memref<256x128xbf16, #tpu.memory_space<vmem>>, vector<256x128xbf16>
    %cst = arith.constant dense<0.000000e+00> : vector<8x128xf32>
    %3 = tpu.matmul %1, %2, %cst {dimension_numbers = #tpu.dot_dimension_numbers<[1], [0], [0], [1], [0, 0, 1, 1], [], []>} : vector<8x256xbf16>, vector<256x128xbf16>, vector<8x128xf32> -> vector<8x128xf32>
    %c0_3 = arith.constant 0 : index
    %c0_4 = arith.constant 0 : index
    %4 = vector.load %arg3[%c0_3, %c0_4] : memref<1x128xf32, #tpu.memory_space<vmem>>, vector<1x128xf32>
    %5 = vector.broadcast %4 : vector<1x128xf32> to vector<8x128xf32>
    %6 = arith.addf %3, %5 : vector<8x128xf32>
    %cst_5 = arith.constant 0.000000e+00 : f32
    %7 = vector.broadcast %cst_5 : f32 to vector<8x128xf32>
    %8 = arith.maximumf %6, %7 : vector<8x128xf32>
    %9 = arith.truncf %8 : vector<8x128xf32> to vector<8x128xbf16>
    %c0_6 = arith.constant 0 : index
    %c0_7 = arith.constant 0 : index
    %10 = vector.load %arg4[%c0_6, %c0_7] : memref<128x128xbf16, #tpu.memory_space<vmem>>, vector<128x128xbf16>
    %cst_8 = arith.constant dense<0.000000e+00> : vector<8x128xf32>
    %11 = tpu.matmul %9, %10, %cst_8 {dimension_numbers = #tpu.dot_dimension_numbers<[1], [0], [0], [1], [0, 0, 1, 1], [], []>} : vector<8x128xbf16>, vector<128x128xbf16>, vector<8x128xf32> -> vector<8x128xf32>
    %c0_9 = arith.constant 0 : index
    %c0_10 = arith.constant 0 : index
    %12 = vector.load %arg5[%c0_9, %c0_10] : memref<1x128xf32, #tpu.memory_space<vmem>>, vector<1x128xf32>
    %13 = vector.broadcast %12 : vector<1x128xf32> to vector<8x128xf32>
    %14 = arith.addf %11, %13 : vector<8x128xf32>
    %cst_11 = arith.constant 0.000000e+00 : f32
    %15 = vector.broadcast %cst_11 : f32 to vector<8x128xf32>
    %16 = arith.maximumf %14, %15 : vector<8x128xf32>
    %17 = arith.truncf %16 : vector<8x128xf32> to vector<8x128xbf16>
    %c0_12 = arith.constant 0 : index
    %c0_13 = arith.constant 0 : index
    %18 = vector.load %arg6[%c0_12, %c0_13] : memref<128x256xbf16, #tpu.memory_space<vmem>>, vector<128x256xbf16>
    %cst_14 = arith.constant dense<0.000000e+00> : vector<8x256xf32>
    %19 = tpu.matmul %17, %18, %cst_14 {dimension_numbers = #tpu.dot_dimension_numbers<[1], [0], [0], [1], [0, 0, 1, 1], [], []>} : vector<8x128xbf16>, vector<128x256xbf16>, vector<8x256xf32> -> vector<8x256xf32>
    %c0_15 = arith.constant 0 : index
    %c0_16 = arith.constant 0 : index
    %20 = vector.load %arg7[%c0_15, %c0_16] : memref<1x256xf32, #tpu.memory_space<vmem>>, vector<1x256xf32>
    %21 = vector.broadcast %20 : vector<1x256xf32> to vector<8x256xf32>
    %22 = arith.addf %19, %21 : vector<8x256xf32>
    %23 = vector.extract_strided_slice %22 {offsets = [0, 0], sizes = [8, 128], strides = [1, 1]} : vector<8x256xf32> to vector<8x128xf32>
    %24 = vector.extract_strided_slice %22 {offsets = [0, 128], sizes = [8, 128], strides = [1, 1]} : vector<8x256xf32> to vector<8x128xf32>
    %c0_17 = arith.constant 0 : index
    %c0_18 = arith.constant 0 : index
    %25 = vector.load %arg1[%c0_17, %c0_18] : memref<8x128xf32, #tpu.memory_space<vmem>>, vector<8x128xf32>
    %cst_19 = arith.constant 5.000000e-01 : f32
    %26 = vector.broadcast %cst_19 : f32 to vector<8x128xf32>
    %27 = arith.mulf %26, %24 : vector<8x128xf32>
    %28 = math.exp %27 : vector<8x128xf32>
    %29 = arith.mulf %25, %28 : vector<8x128xf32>
    %30 = arith.addf %29, %23 : vector<8x128xf32>
    %31 = arith.truncf %30 : vector<8x128xf32> to vector<8x128xbf16>
    %c0_20 = arith.constant 0 : index
    %c0_21 = arith.constant 0 : index
    %32 = vector.load %arg8[%c0_20, %c0_21] : memref<128x128xbf16, #tpu.memory_space<vmem>>, vector<128x128xbf16>
    %cst_22 = arith.constant dense<0.000000e+00> : vector<8x128xf32>
    %33 = tpu.matmul %31, %32, %cst_22 {dimension_numbers = #tpu.dot_dimension_numbers<[1], [0], [0], [1], [0, 0, 1, 1], [], []>} : vector<8x128xbf16>, vector<128x128xbf16>, vector<8x128xf32> -> vector<8x128xf32>
    %c0_23 = arith.constant 0 : index
    %c0_24 = arith.constant 0 : index
    %34 = vector.load %arg9[%c0_23, %c0_24] : memref<1x128xf32, #tpu.memory_space<vmem>>, vector<1x128xf32>
    %35 = vector.broadcast %34 : vector<1x128xf32> to vector<8x128xf32>
    %36 = arith.addf %33, %35 : vector<8x128xf32>
    %cst_25 = arith.constant 0.000000e+00 : f32
    %37 = vector.broadcast %cst_25 : f32 to vector<8x128xf32>
    %38 = arith.maximumf %36, %37 : vector<8x128xf32>
    %39 = arith.truncf %38 : vector<8x128xf32> to vector<8x128xbf16>
    %c0_26 = arith.constant 0 : index
    %c0_27 = arith.constant 0 : index
    %40 = vector.load %arg10[%c0_26, %c0_27] : memref<128x128xbf16, #tpu.memory_space<vmem>>, vector<128x128xbf16>
    %cst_28 = arith.constant dense<0.000000e+00> : vector<8x128xf32>
    %41 = tpu.matmul %39, %40, %cst_28 {dimension_numbers = #tpu.dot_dimension_numbers<[1], [0], [0], [1], [0, 0, 1, 1], [], []>} : vector<8x128xbf16>, vector<128x128xbf16>, vector<8x128xf32> -> vector<8x128xf32>
    %c0_29 = arith.constant 0 : index
    %c0_30 = arith.constant 0 : index
    %42 = vector.load %arg11[%c0_29, %c0_30] : memref<1x128xf32, #tpu.memory_space<vmem>>, vector<1x128xf32>
    %43 = vector.broadcast %42 : vector<1x128xf32> to vector<8x128xf32>
    %44 = arith.addf %41, %43 : vector<8x128xf32>
    %cst_31 = arith.constant 0.000000e+00 : f32
    %45 = vector.broadcast %cst_31 : f32 to vector<8x128xf32>
    %46 = arith.maximumf %44, %45 : vector<8x128xf32>
    %47 = arith.truncf %46 : vector<8x128xf32> to vector<8x128xbf16>
    %c0_32 = arith.constant 0 : index
    %c0_33 = arith.constant 0 : index
    %48 = vector.load %arg12[%c0_32, %c0_33] : memref<128x256xbf16, #tpu.memory_space<vmem>>, vector<128x256xbf16>
    %cst_34 = arith.constant dense<0.000000e+00> : vector<8x256xf32>
    %49 = tpu.matmul %47, %48, %cst_34 {dimension_numbers = #tpu.dot_dimension_numbers<[1], [0], [0], [1], [0, 0, 1, 1], [], []>} : vector<8x128xbf16>, vector<128x256xbf16>, vector<8x256xf32> -> vector<8x256xf32>
    %c0_35 = arith.constant 0 : index
    %c0_36 = arith.constant 0 : index
    %50 = vector.load %arg13[%c0_35, %c0_36] : memref<1x256xf32, #tpu.memory_space<vmem>>, vector<1x256xf32>
    %51 = vector.broadcast %50 : vector<1x256xf32> to vector<8x256xf32>
    %52 = arith.addf %49, %51 : vector<8x256xf32>
    %53 = arith.negf %52 : vector<8x256xf32>
    %54 = math.exp %53 : vector<8x256xf32>
    %cst_37 = arith.constant 1.000000e+00 : f32
    %55 = vector.broadcast %cst_37 : f32 to vector<8x256xf32>
    %56 = arith.addf %55, %54 : vector<8x256xf32>
    %57 = arith.divf %55, %56 : vector<8x256xf32>
    %c0_38 = arith.constant 0 : index
    %c0_39 = arith.constant 0 : index
    %58 = vector.load %arg14[%c0_38, %c0_39] : memref<8x256xf32, #tpu.memory_space<vmem>>, vector<8x256xf32>
    tpu.vector_store %arg14[%c0_38, %c0_39], %57 {strides = array<i32>} : memref<8x256xf32, #tpu.memory_space<vmem>>, vector<8x256xf32>,
    %c0_40 = arith.constant 0 : index
    %c0_41 = arith.constant 0 : index
    %59 = vector.load %arg15[%c0_40, %c0_41] : memref<8x128xf32, #tpu.memory_space<vmem>>, vector<8x128xf32>
    tpu.vector_store %arg15[%c0_40, %c0_41], %23 {strides = array<i32>} : memref<8x128xf32, #tpu.memory_space<vmem>>, vector<8x128xf32>,
    %c0_42 = arith.constant 0 : index
    %c0_43 = arith.constant 0 : index
    %60 = vector.load %arg16[%c0_42, %c0_43] : memref<8x128xf32, #tpu.memory_space<vmem>>, vector<8x128xf32>
    tpu.vector_store %arg16[%c0_42, %c0_43], %24 {strides = array<i32>} : memref<8x128xf32, #tpu.memory_space<vmem>>, vector<8x128xf32>,
    return
  }
}

</mosaic_0001>

<bundles_post_ra>
// kernel: tpu_custom_call.1
= control target key start
LH: loop header
LB: loop body
LE: loop exit
PB: predicated region body
PF: predicated region fallthrough
CT: control target
= control target key end

     0   :  { %s1792_s0 = inlined_call_operand.hbm [shape: f32[8,256], index: 0, kind: input, shape index: {}]   ;;  %s1793_s1 = inlined_call_operand.hbm [shape: f32[8,128], index: 1, kind: input, shape index: {}]   ;;  %s1794_s2 = inlined_call_operand.hbm [shape: bf16[256,128], index: 2, kind: input, shape index: {}]   ;;  %s1795_s3 = inlined_call_operand.vmem [shape: f32[1,128], index: 3, kind: input, shape index: {}]   ;;  %s1796_s4 = inlined_call_operand.hbm [shape: bf16[128,128], index: 4, kind: input, shape index: {}]   ;;  %s1797_s5 = inlined_call_operand.vmem [shape: f32[1,128], index: 5, kind: input, shape index: {}]   ;;  %s1798_s6 = inlined_call_operand.hbm [shape: bf16[128,256], index: 6, kind: input, shape index: {}]   ;;  %s1799_s7 = inlined_call_operand.vmem [shape: f32[1,256], index: 7, kind: input, shape index: {}]   ;;  %s1800_s8 = inlined_call_operand.hbm [shape: bf16[128,128], index: 8, kind: input, shape index: {}]   ;;  %s1801_s9 = inlined_call_operand.vmem [shape: f32[1,128], index: 9, kind: input, shape index: {}]   ;;  %s1802_s10 = inlined_call_operand.hbm [shape: bf16[128,128], index: 10, kind: input, shape index: {}]   ;;  %s1803_s11 = inlined_call_operand.vmem [shape: f32[1,128], index: 11, kind: input, shape index: {}]   ;;  %s1804_s12 = inlined_call_operand.hbm [shape: bf16[128,256], index: 12, kind: input, shape index: {}]   ;;  %s1805_s13 = inlined_call_operand.vmem [shape: f32[1,256], index: 13, kind: input, shape index: {}]   ;;  %s1806_s14 = inlined_call_operand.hbm [shape: f32[8,256], index: 14, kind: output, shape index: {0}]   ;;  %s1807_s15 = inlined_call_operand.hbm [shape: f32[8,128], index: 15, kind: output, shape index: {1}]   ;;  %s1808_s16 = inlined_call_operand.hbm [shape: f32[8,128], index: 16, kind: output, shape index: {2}]  }
   0x1   :  { %1809 = sst [smem:[#allocation27_spill]] %s1792_s0 }
   0x2   :  { %22 = vsyncpa [#allocation3], 0 }
   0x3   :  { %23 = vsyncpa [#allocation6], 0 }
   0x4   :  { %24 = vsyncpa [#allocation9], 0 }
   0x5   :  { %25 = vsyncpa [#allocation12], 0 }
   0x6   :  { %26 = vsyncpa [#allocation15], 0 }
   0x7   :  { %27 = vsyncpa [#allocation4], 0 }
   0x8   :  { %28 = vsyncpa [#allocation18], 0  ;;  %s1582_s21 = smov [#allocation5]  }
   0x9   :  { %s45_s22 = sshll.u32 %s1582_s21, 4  ;;  %s46_s22 = int_to_ptr.vmem [resolvable:$true] %s45_s22 }
   0xa   :  { %s1356_s23 = scalar_lea.vmem %s46_s22, 128  ;;  %p1361_p1 = scmp.lt.s32.totalorder %s46_s22, %s46_s22 }
   0xb   :  { %p1357_p0 = scmp.ne.s32.totalorder %s46_s22, %s1356_s23  ;;  %p1362_p2 = scmp.lt.s32.totalorder %s1356_s23, %s1356_s23 }
   0xd   :  { %p1363_p3 = por %p1362_p2, %p1361_p1 }
   0xf   :  { %p1364_p4 = pnand %p1363_p3, %p1357_p0 }
  0x11   :  { %1367 = shalt.err (!%p1364_p4)
}
  0x12   :  { %48 = dma.hbm_to_vmem [thread:$0]  %s1793_s1, 128, %s46_s22, [#allocation6]  }
  0x13   :  { %s1583_s26 = smov [#allocation8]   ;;  %s1584_s28 = smov [#allocation11]  }
  0x14   :  { %s68_s27 = sshll.u32 %s1583_s26, 4  ;;  %s96_s29 = sshll.u32 %s1584_s28, 4  ;;  %s69_s27 = int_to_ptr.vmem [resolvable:$true] %s68_s27  ;;  %s97_s29 = int_to_ptr.vmem [resolvable:$true] %s96_s29 }
  0x15   :  { %s1376_s30 = scalar_lea.vmem %s69_s27, 1024  ;;  %p1381_p6 = scmp.lt.s32.totalorder %s69_s27, %s69_s27 }
  0x16   :  { %p1377_p5 = scmp.ne.s32.totalorder %s69_s27, %s1376_s30  ;;  %p1382_p7 = scmp.lt.s32.totalorder %s1376_s30, %s1376_s30 }
  0x18   :  { %p1383_p8 = por %p1382_p7, %p1381_p6 }
  0x1a   :  { %p1384_p9 = pnand %p1383_p8, %p1377_p5 }
  0x1c   :  { %1387 = shalt.err (!%p1384_p9)
}
  0x1d   :  { %s1585_s0 = smov 64   ;;  %s1586_s17 = smov 4  }
  0x1e   :  { %74 = dma.hbm_to_vmem [thread:$0]  %s1796_s4, 1024, %s69_s27, [#allocation9], %s1585_s0, %s1585_s0, %s1586_s17  }
  0x1f   :  { %s1396_s1 = scalar_lea.vmem %s97_s29, 1024  ;;  %p1401_p11 = scmp.lt.s32.totalorder %s97_s29, %s97_s29 }
  0x20   :  { %p1397_p10 = scmp.ne.s32.totalorder %s97_s29, %s1396_s1  ;;  %p1402_p12 = scmp.lt.s32.totalorder %s1396_s1, %s1396_s1 }
  0x22   :  { %p1403_p13 = por %p1402_p12, %p1401_p11 }
  0x24   :  { %p1404_p0 = pnand %p1403_p13, %p1397_p10 }
  0x26   :  { %1407 = shalt.err (!%p1404_p0)
}
  0x27   :  { %102 = dma.hbm_to_vmem [thread:$0]  %s1800_s8, 1024, %s97_s29, [#allocation12], %s1585_s0, %s1585_s0, %s1586_s17  }
  0x28   :  { %s1587_s22 = smov [#allocation2]   ;;  %s1588_s24 = smov [#allocation7]  }
  0x29   :  { %s35_s23 = sshll.u32 %s1587_s22, 4  ;;  %s54_s4 = sshll.u32 %s1588_s24, 4  ;;  %s36_s23 = int_to_ptr.vmem [resolvable:$true] %s35_s23  ;;  %s55_s4 = int_to_ptr.vmem [resolvable:$true] %s54_s4 }
  0x2a   :  { %s1416_s25 = scalar_lea.vmem %s36_s23, 256  ;;  %p1421_p2 = scmp.lt.s32.totalorder %s36_s23, %s36_s23 }
  0x2b   :  { %p1417_p1 = scmp.ne.s32.totalorder %s36_s23, %s1416_s25  ;;  %p1422_p3 = scmp.lt.s32.totalorder %s1416_s25, %s1416_s25 }
  0x2d   :  { %p1423_p4 = por %p1422_p3, %p1421_p2 }
  0x2f   :  { %p1424_p5 = pnand %p1423_p4, %p1417_p1 }
  0x31   :  { %1427 = shalt.err (!%p1424_p5)
}
  0x32   :  { %s1810_s28 = sld [smem:[#allocation27_spill]]  ;;  %s1436_s30 = scalar_lea.vmem %s55_s4, 2048 }
  0x33   :  { %p1437_p6 = scmp.ne.s32.totalorder %s55_s4, %s1436_s30  ;;  %p1441_p7 = scmp.lt.s32.totalorder %s55_s4, %s55_s4 }
  0x34   :  { %p1442_p8 = scmp.lt.s32.totalorder %s1436_s30, %s1436_s30 }
  0x36   :  { %p1443_p9 = por %p1442_p8, %p1441_p7 }
  0x38   :  { %38 = dma.hbm_to_vmem [thread:$0]  %s1810_s28, 256, %s36_s23, [#allocation3]  }
  0x39   :  { %p1444_p10 = pnand %p1443_p9, %p1437_p6 }
  0x3b   :  { %1447 = shalt.err (!%p1444_p10)
}
  0x3c   :  { %60 = dma.hbm_to_vmem [thread:$0]  %s1794_s2, 2048, %s55_s4, [#allocation6], %s1585_s0, %s1585_s0, %s1586_s17  }
  0x3d   :  { %s1589_s18 = smov [#allocation10]  }
  0x3e   :  { %s82_s19 = sshll.u32 %s1589_s18, 4  ;;  %s83_s19 = int_to_ptr.vmem [resolvable:$true] %s82_s19 }
  0x3f   :  { %s1456_s1 = scalar_lea.vmem %s83_s19, 2048  ;;  %p1461_p12 = scmp.lt.s32.totalorder %s83_s19, %s83_s19 }
  0x40   :  { %p1457_p11 = scmp.ne.s32.totalorder %s83_s19, %s1456_s1  ;;  %p1462_p13 = scmp.lt.s32.totalorder %s1456_s1, %s1456_s1 }
  0x42   :  { %p1463_p0 = por %p1462_p13, %p1461_p12 }
  0x44   :  { %p1464_p1 = pnand %p1463_p0, %p1457_p11 }
  0x46   :  { %1467 = shalt.err (!%p1464_p1)
}
  0x47   :  { %s1590_s20 = smov 128   ;;  %s1591_s21 = smov 8  }
  0x48   :  { %88 = dma.hbm_to_vmem [thread:$0]  %s1798_s6, 2048, %s83_s19, [#allocation9], %s1590_s20, %s1590_s20, %s1591_s21  }
  0x49   :  { %s1592_s24 = smov [#allocation13]   ;;  %s1593_s26 = smov [#allocation14]  }
  0x4a   :  { %s110_s25 = sshll.u32 %s1592_s24, 4  ;;  %s124_s2 = sshll.u32 %s1593_s26, 4  ;;  %s111_s25 = int_to_ptr.vmem [resolvable:$true] %s110_s25  ;;  %s125_s2 = int_to_ptr.vmem [resolvable:$true] %s124_s2 }
  0x4b   :  { %s1476_s4 = scalar_lea.vmem %s111_s25, 1024  ;;  %p1481_p3 = scmp.lt.s32.totalorder %s111_s25, %s111_s25 }
  0x4c   :  { %p1477_p2 = scmp.ne.s32.totalorder %s111_s25, %s1476_s4  ;;  %p1482_p4 = scmp.lt.s32.totalorder %s1476_s4, %s1476_s4 }
  0x4e   :  { %p1483_p5 = por %p1482_p4, %p1481_p3 }
  0x50   :  { %p1484_p6 = pnand %p1483_p5, %p1477_p2 }
  0x52   :  { %1487 = shalt.err (!%p1484_p6)
}
  0x53   :  { %116 = dma.hbm_to_vmem [thread:$0]  %s1802_s10, 1024, %s111_s25, [#allocation12], %s1585_s0, %s1585_s0, %s1586_s17  }
  0x54   :  { %s1496_s6 = scalar_lea.vmem %s125_s2, 2048  ;;  %p1501_p8 = scmp.lt.s32.totalorder %s125_s2, %s125_s2 }
  0x55   :  { %p1497_p7 = scmp.ne.s32.totalorder %s125_s2, %s1496_s6  ;;  %p1502_p9 = scmp.lt.s32.totalorder %s1496_s6, %s1496_s6 }
  0x57   :  { %p1503_p10 = por %p1502_p9, %p1501_p8 }
  0x59   :  { %p1504_p11 = pnand %p1503_p10, %p1497_p7 }
  0x5b   :  { %1507 = shalt.err (!%p1504_p11)
}
  0x5c   :  { %130 = dma.hbm_to_vmem [thread:$0]  %s1804_s12, 2048, %s125_s2, [#allocation15], %s1590_s20, %s1590_s20, %s1591_s21  }
  0x5d   :  { %1568 = dma.done.wait [#allocation3], 256  }
  0x5e   :  { %1569 = vsyncadd [#allocation3], 4294967040 }
  0x5f   :  { %1570 = dma.done.wait [#allocation6], 2176  }
  0x60   :  { %1571 = vsyncadd [#allocation6], 4294965120 }
  0x61   :  { %1572 = dma.done.wait [#allocation9], 3072  }
  0x62   :  { %1573 = vsyncadd [#allocation9], 4294964224 }
  0x63   :  { %1574 = dma.done.wait [#allocation12], 2048  }
  0x64   :  { %1575 = vsyncadd [#allocation12], 4294965248 }
  0x65   :  { %1576 = dma.done.wait [#allocation15], 2048  }
  0x66   :  { %1577 = vsyncadd [#allocation15], 4294965248  ;;  %v1594_v0 = vmov 0.0   ;;  %v1250_v1 = vld [vmem:[#allocation7 + $0x78] sm:$0xff]   ;;  %v1252_v3 = vld [vmem:[#allocation7 + $0x70] sm:$0xff]   ;;  %vm1595_vm0 = vmmov 0  }
  0x67   :  { %1172 = vmatprep.subr.bf16.mxu1 %v1594_v0  ;;  %v1251_v2 = vld [vmem:[#allocation7 + $0x38] sm:$0xff]   ;;  %1123 = vmatprep.subr.bf16.mxu0 %v1250_v1  ;;  %v1253_v4 = vld [vmem:[#allocation7 + $0x30] sm:$0xff]   ;;  %v1254_v5 = vld [vmem:[#allocation7 + $0x68] sm:$0xff]   ;;  %v1596_v54 = vmov 0  }
  0x68   :  { %1124 = vmatpush3.bf16.msra.mxu0 %v1251_v2  ;;  %v1255_v6 = vld [vmem:[#allocation7 + $0x28] sm:$0xff]   ;;  %v1256_v7 = vld [vmem:[#allocation7 + $0x60] sm:$0xff]   ;;  %v1258_v9 = vld [vmem:[#allocation7 + $0x58] sm:$0xff]   ;;  %1188 = vmatprep.mubr.msk.bf16.mxu1 %vm1595_vm0, %v1594_v0 }
  0x69   :  { %1125 = vmatprep.subr.bf16.mxu0 %v1252_v3  ;;  %v1257_v8 = vld [vmem:[#allocation7 + $0x20] sm:$0xff]   ;;  %v1259_v10 = vld [vmem:[#allocation7 + $0x18] sm:$0xff]   ;;  %v1260_v11 = vld [vmem:[#allocation7 + $0x50] sm:$0xff]  }
  0x6a   :  { %v159_v12 = vld [vmem:[#allocation2 + $0x8] sm:$0xff]  ;;  %v1266_v14 = vld [vmem:[#allocation8 + $0x38] sm:$0xff]   ;;  %v1262_v16 = vld [vmem:[#allocation7 + $0x48] sm:$0xff]  }
  0x6b   :  { %v161_v13 = vpack.c.bf16 %v159_v12, %v159_v12  ;;  %v1261_v15 = vld [vmem:[#allocation7 + $0x10] sm:$0xff]   ;;  %1173 = vmatpush3.bf16.msra.mxu1 %v1266_v14  ;;  %v1263_v18 = vld [vmem:[#allocation7 + $0x8] sm:$0xff]   ;;  %v1264_v19 = vld [vmem:[#allocation7 + $0x40] sm:$0xff]   ;;  %v470_v14 = vlaneseq }
  0x6c   :  { %1126 = vmatpush3.bf16.msra.mxu0 %v1253_v4  ;;  %v1267_v17 = vld [vmem:[#allocation8 + $0x30] sm:$0xff]   ;;  %1174 = vmatprep.subr.bf16.mxu1 %v1594_v0  ;;  %v1268_v20 = vld [vmem:[#allocation8 + $0x28] sm:$0xff]   ;;  %v1265_v21 = vld [vmem:[#allocation7] sm:$0xff]  }
  0x6d   :  { %1127 = vmatprep.subr.bf16.mxu0 %v1254_v5  ;;  %329 = vmatprep.mubr.bf16.mxu0 %v161_v13  ;;  %v158_v22 = vld [vmem:[#allocation2] sm:$0xff]  ;;  %v1269_v23 = vld [vmem:[#allocation8 + $0x20] sm:$0xff]   ;;  %v1270_v25 = vld [vmem:[#allocation8 + $0x18] sm:$0xff]  }
  0x6e   :  { %v160_v24 = vpack.c.bf16 %v158_v22, %v158_v22  ;;  %v1271_v26 = vld [vmem:[#allocation8 + $0x10] sm:$0xff]   ;;  %v1272_v27 = vld [vmem:[#allocation8 + $0x8] sm:$0xff]   ;;  %v1273_v28 = vld [vmem:[#allocation8] sm:$0xff]  }
  0x6f   :  { %1175 = vmatpush3.bf16.msra.mxu1 %v1267_v17  ;;  %v1274_v29 = vld [vmem:[#allocation10 + $0x70] ss:$8 sps:$4 sm:$0xff]   ;;  %v1276_v30 = vld [vmem:[#allocation10 + $0x74] ss:$8 sps:$4 sm:$0xff]   ;;  %v1279_v31 = vld [vmem:[#allocation10 + $0x64] ss:$8 sps:$4 sm:$0xff]  }
  0x70   :  { %1128 = vmatpush3.bf16.msra.mxu0 %v1255_v6  ;;  %1176 = vmatprep.subr.bf16.mxu1 %v1594_v0  ;;  %v1277_v32 = vld [vmem:[#allocation10 + $0x60] ss:$8 sps:$4 sm:$0xff]   ;;  %v1282_v33 = vld [vmem:[#allocation10 + $0x54] ss:$8 sps:$4 sm:$0xff]   ;;  %v1280_v34 = vld [vmem:[#allocation10 + $0x50] ss:$8 sps:$4 sm:$0xff]  }
  0x71   :  { %1129 = vmatprep.subr.bf16.mxu0 %v1256_v7  ;;  %v1285_v35 = vld [vmem:[#allocation10 + $0x44] ss:$8 sps:$4 sm:$0xff]   ;;  %v1283_v36 = vld [vmem:[#allocation10 + $0x40] ss:$8 sps:$4 sm:$0xff]   ;;  %v1288_v37 = vld [vmem:[#allocation10 + $0x34] ss:$8 sps:$4 sm:$0xff]  }
  0x72   :  { %v1286_v38 = vld [vmem:[#allocation10 + $0x30] ss:$8 sps:$4 sm:$0xff]   ;;  %v1291_v39 = vld [vmem:[#allocation10 + $0x24] ss:$8 sps:$4 sm:$0xff]   ;;  %v1289_v40 = vld [vmem:[#allocation10 + $0x20] ss:$8 sps:$4 sm:$0xff]  }
  0x73   :  { %1177 = vmatpush3.bf16.msra.mxu1 %v1268_v20  ;;  %v1294_v41 = vld [vmem:[#allocation10 + $0x14] ss:$8 sps:$4 sm:$0xff]   ;;  %v1292_v42 = vld [vmem:[#allocation10 + $0x10] ss:$8 sps:$4 sm:$0xff]   ;;  %v1045_v44 = vld [vmem:[%s1795_s3] ss:$0 sm:$0xff] }
  0x74   :  { %1130 = vmatpush3.bf16.msra.mxu0 %v1257_v8  ;;  %1178 = vmatprep.subr.bf16.mxu1 %v1594_v0  ;;  %v1297_v52 = vld [vmem:[#allocation10 + $0x4] ss:$8 sps:$4 sm:$0xff]   ;;  %v1295_v53 = vld [vmem:[#allocation10] ss:$8 sps:$4 sm:$0xff]   ;;  %v1298_v55 = vld [vmem:[#allocation11 + $0x38] sm:$0xff]  }
  0x75   :  { %1131 = vmatprep.subr.bf16.mxu0 %v1258_v9  ;;  %v1062_v56 = vld [vmem:[%s1797_s5] ss:$0 sm:$0xff]  ;;  %v1299_v1 = vld [vmem:[#allocation11 + $0x30] sm:$0xff]   ;;  %v1301_v3 = vld [vmem:[#allocation11 + $0x20] sm:$0xff]  }
  0x76   :  { %v1300_v2 = vld [vmem:[#allocation11 + $0x28] sm:$0xff]   ;;  %v1302_v4 = vld [vmem:[#allocation11 + $0x18] sm:$0xff]   ;;  %v1303_v5 = vld [vmem:[#allocation11 + $0x10] sm:$0xff]  }
  0x77   :  { %1179 = vmatpush3.bf16.msra.mxu1 %v1269_v23  ;;  %v1304_v6 = vld [vmem:[#allocation11 + $0x8] sm:$0xff]   ;;  %v1305_v7 = vld [vmem:[#allocation11] sm:$0xff]   ;;  %v1306_v8 = vld [vmem:[#allocation13 + $0x38] sm:$0xff]  }
  0x78   :  { %1132 = vmatpush3.bf16.msra.mxu0 %v1259_v10  ;;  %1180 = vmatprep.subr.bf16.mxu1 %v1594_v0  ;;  %v1307_v9 = vld [vmem:[#allocation13 + $0x30] sm:$0xff]   ;;  %v1308_v10 = vld [vmem:[#allocation13 + $0x28] sm:$0xff]   ;;  %v1310_v12 = vld [vmem:[#allocation13 + $0x18] sm:$0xff]  }
  0x79   :  { %1133 = vmatprep.subr.bf16.mxu0 %v1260_v11  ;;  %v1309_v11 = vld [vmem:[#allocation13 + $0x20] sm:$0xff]   ;;  %v1311_v13 = vld [vmem:[#allocation13 + $0x10] sm:$0xff]   ;;  %v468_v17 = vld [vmem:[%s1799_s7] sm:$0x3] }
  0x7b   :  { %1181 = vmatpush3.bf16.msra.mxu1 %v1270_v25 }
  0x7c   :  { %1134 = vmatpush3.bf16.msra.mxu0 %v1261_v15  ;;  %1182 = vmatprep.subr.bf16.mxu1 %v1594_v0  ;;  %v1757_v15 = vshrl.u32 %v470_v14, 7 }
  0x7d   :  { %1135 = vmatprep.subr.bf16.mxu0 %v1262_v16 }
  0x7e   :  { %v472_v16 = vsub.s32 0, %v1757_v15 }
  0x7f   :  { %1183 = vmatpush3.bf16.msra.mxu1 %v1271_v26 }
  0x80   :  { %1136 = vmatpush3.bf16.msra.mxu0 %v1263_v18  ;;  %1184 = vmatprep.subr.bf16.mxu1 %v1594_v0  ;;  %v476_v18 = vsub.s32 1, %v1757_v15 }
  0x81   :  { %1137 = vmatprep.subr.bf16.mxu0 %v1264_v19  ;;  %v473_v19 = vrot.slane %v468_v17, %v472_v16 }
  0x82   :  { %v477_v20 = vrot.slane %v468_v17, %v476_v18 }
  0x83   :  { %1185 = vmatpush3.bf16.msra.mxu1 %v1272_v27 }
  0x84   :  { %1138 = vmatpush3.bf16.msra.mxu0 %v1265_v21  ;;  %1186 = vmatprep.subr.bf16.mxu1 %v1594_v0 }
  0x85   :  { %560 = vmatprep.subr.bf16.mxu0 %v1276_v30 }
  0x87   :  { %330 = vmatmul.mubr.bf16.vlgmr.msra.gmra.mxu0 %v160_v24  ;;  %1187 = vmatpush3.bf16.msra.mxu1 %v1273_v28 }
  0x88   :  { %1192 = vmatprep.subr.bf16.mxu1 %v1594_v0  ;;  %561 = vmatpush1.bf16.msra.mxu0 %v1274_v29  ;;  %v601_v29 = vld [vmem:[#allocation5] sm:$0xff] }
  0x89   :  { %562 = vmatprep.subr.bf16.mxu0 %v1279_v31  ;;  %592 = vmatprep.mubr.bf16.mxu0 %v1596_v54 }
  0x8c   :  { %563 = vmatpush1.bf16.msra.mxu0 %v1277_v32 }
  0x8d   :  { %564 = vmatprep.subr.bf16.mxu0 %v1282_v33 }
  0x90   :  { %565 = vmatpush1.bf16.msra.mxu0 %v1280_v34  ;;  %v1312_v34 = vld [vmem:[#allocation13 + $0x8] sm:$0xff]  }
  0x91   :  { %566 = vmatprep.subr.bf16.mxu0 %v1285_v35  ;;  %v1313_v35 = vld [vmem:[#allocation13] sm:$0xff]  }
  0x94   :  { %567 = vmatpush1.bf16.msra.mxu0 %v1283_v36  ;;  %v1314_v36 = vld [vmem:[#allocation14 + $0x70] ss:$8 sps:$4 sm:$0xff]  }
  0x95   :  { %568 = vmatprep.subr.bf16.mxu0 %v1288_v37  ;;  %v1316_v37 = vld [vmem:[#allocation14 + $0x74] ss:$8 sps:$4 sm:$0xff]  }
  0x98   :  { %569 = vmatpush1.bf16.msra.mxu0 %v1286_v38  ;;  %v1319_v38 = vld [vmem:[#allocation14 + $0x64] ss:$8 sps:$4 sm:$0xff]  }
  0x99   :  { %570 = vmatprep.subr.bf16.mxu0 %v1291_v39  ;;  %v1317_v39 = vld [vmem:[#allocation14 + $0x60] ss:$8 sps:$4 sm:$0xff]  }
  0x9c   :  { %571 = vmatpush1.bf16.msra.mxu0 %v1289_v40  ;;  %v1322_v40 = vld [vmem:[#allocation14 + $0x54] ss:$8 sps:$4 sm:$0xff]  }
  0x9d   :  { %572 = vmatprep.subr.bf16.mxu0 %v1294_v41  ;;  %v1320_v41 = vld [vmem:[#allocation14 + $0x50] ss:$8 sps:$4 sm:$0xff]  }
  0xa0   :  { %573 = vmatpush1.bf16.msra.mxu0 %v1292_v42  ;;  %v1325_v42 = vld [vmem:[#allocation14 + $0x44] ss:$8 sps:$4 sm:$0xff]  }
  0xa1   :  { %574 = vmatprep.subr.bf16.mxu0 %v1297_v52 }
  0xa4   :  { %575 = vmatpush1.bf16.msra.mxu0 %v1295_v53 }
  0xa5   :  { %1212 = vmatprep.subr.bf16.mxu0 %v1594_v0 }
 0x147   :  { %v1139_v43 = vpop.f32.mrf.mxu0 }
 0x149   :  { %v1140_v45 = vpop.f32.mrf.mxu0 }
 0x14a   :  { %v1141_v46 = vadd.f32 %v1140_v45, %v1139_v43  ;;  %v1323_v43 = vld [vmem:[#allocation14 + $0x40] ss:$8 sps:$4 sm:$0xff]   ;;  %v1331_v45 = vld [vmem:[#allocation14 + $0x24] ss:$8 sps:$4 sm:$0xff]  }
 0x14b   :  { %v1142_v47 = vpop.f32.mrf.mxu0 }
 0x14c   :  { %v332_v48 = vadd.f32 %v1141_v46, %v1045_v44  ;;  %v1328_v44 = vld [vmem:[#allocation14 + $0x34] ss:$8 sps:$4 sm:$0xff]   ;;  %v1329_v46 = vld [vmem:[#allocation14 + $0x20] ss:$8 sps:$4 sm:$0xff]  }
 0x14d   :  { %v1143_v49 = vpop.f32.mrf.mxu0  ;;  %v1334_v47 = vld [vmem:[#allocation14 + $0x14] ss:$8 sps:$4 sm:$0xff]  }
 0x14e   :  { %v337_v50 = vmax.f32 %v332_v48, 0.0  ;;  %v1332_v48 = vld [vmem:[#allocation14 + $0x10] ss:$8 sps:$4 sm:$0xff]   ;;  %v1087_v49 = vld [vmem:[%s1801_s9] ss:$0 sm:$0xff]  ;;  %s1597_s9 = smov [#allocation17]  }
 0x14f   :  { %s1015_s1 = sshll.u32 %s1597_s9, 4  ;;  %s1016_s1 = int_to_ptr.vmem [resolvable:$true] %s1015_s1 }
 0x150   :  { %v338_v51 = vpack.c.bf16 %v337_v50, %v337_v50  ;;  %s1508_s20 = scalar_lea.vmem %s1016_s1, 128  ;;  %p1513_p13 = scmp.lt.s32.totalorder %s1016_s1, %s1016_s1 }
 0x151   :  { %p1509_p12 = scmp.ne.s32.totalorder %s1016_s1, %s1508_s20  ;;  %p1514_p0 = scmp.lt.s32.totalorder %s1508_s20, %s1508_s20 }
 0x152   :  { %1189 = vmatmul.mubr.bf16.vlgmr.msra.gmra.mxu1 %v338_v51 }
 0x153   :  { %1208 = vmatprep.mubr.msk.bf16.mxu1 %vm1595_vm0, %v1594_v0  ;;  %1193 = vmatpush3.bf16.msra.mxu1 %v1298_v55  ;;  %p1515_p1 = por %p1514_p0, %p1513_p13 }
 0x154   :  { %1194 = vmatprep.subr.bf16.mxu1 %v1594_v0 }
 0x155   :  { %p1516_p2 = pnand %p1515_p1, %p1509_p12 }
 0x157   :  { %1195 = vmatpush3.bf16.msra.mxu1 %v1299_v1 }
 0x158   :  { %1196 = vmatprep.subr.bf16.mxu1 %v1594_v0 }
 0x15b   :  { %1197 = vmatpush3.bf16.msra.mxu1 %v1300_v2 }
 0x15c   :  { %1198 = vmatprep.subr.bf16.mxu1 %v1594_v0 }
 0x15f   :  { %1199 = vmatpush3.bf16.msra.mxu1 %v1301_v3 }
 0x160   :  { %1200 = vmatprep.subr.bf16.mxu1 %v1594_v0 }
 0x163   :  { %1201 = vmatpush3.bf16.msra.mxu1 %v1302_v4 }
 0x164   :  { %1202 = vmatprep.subr.bf16.mxu1 %v1594_v0 }
 0x167   :  { %1203 = vmatpush3.bf16.msra.mxu1 %v1303_v5 }
 0x168   :  { %1204 = vmatprep.subr.bf16.mxu1 %v1594_v0 }
 0x16b   :  { %1205 = vmatpush3.bf16.msra.mxu1 %v1304_v6 }
 0x16c   :  { %1206 = vmatprep.subr.bf16.mxu1 %v1594_v0 }
 0x16f   :  { %1207 = vmatpush3.bf16.msra.mxu1 %v1305_v7 }
 0x170   :  { %942 = vmatprep.subr.bf16.mxu1 %v1316_v37 }
 0x212   :  { %v444_v57 = vpop.f32.mrf.mxu1 }
 0x213   :  { %v445_v58 = vadd.f32 %v1062_v56, %v444_v57  ;;  %v1337_v57 = vld [vmem:[#allocation14 + $0x4] ss:$8 sps:$4 sm:$0xff]  }
 0x214   :  { %v1190_v59 = vpop.f32.mrf.mxu1 }
 0x215   :  { %v450_v60 = vmax.f32 %v445_v58, 0.0  ;;  %v1335_v58 = vld [vmem:[#allocation14] ss:$8 sps:$4 sm:$0xff]  }
 0x216   :  { %v447_v61 = vpop.f32.mrf.mxu1  ;;  %v1096_v59 = vld [vmem:[%s1803_s11] ss:$0 sm:$0xff] }
 0x217   :  { %v451_v62 = vpack.c.bf16 %v450_v60, %v450_v60 }
 0x218   :  { %v1191_v63 = vpop.f32.mrf.mxu1 }
 0x219   :  { %593 = vmatmul.mubr.bf16.vlgmr.msra.gmra.mxu0 %v451_v62 }
 0x21a   :  { %1228 = vmatprep.mubr.msk.bf16.mxu0 %vm1595_vm0, %v1594_v0  ;;  %1213 = vmatpush3.bf16.msra.mxu0 %v1306_v8 }
 0x21b   :  { %1214 = vmatprep.subr.bf16.mxu0 %v1594_v0 }
 0x21e   :  { %1215 = vmatpush3.bf16.msra.mxu0 %v1307_v9 }
 0x21f   :  { %1216 = vmatprep.subr.bf16.mxu0 %v1594_v0 }
 0x222   :  { %1217 = vmatpush3.bf16.msra.mxu0 %v1308_v10 }
 0x223   :  { %1218 = vmatprep.subr.bf16.mxu0 %v1594_v0 }
 0x226   :  { %1219 = vmatpush3.bf16.msra.mxu0 %v1309_v11 }
 0x227   :  { %1220 = vmatprep.subr.bf16.mxu0 %v1594_v0 }
 0x22a   :  { %1221 = vmatpush3.bf16.msra.mxu0 %v1310_v12 }
 0x22b   :  { %1222 = vmatprep.subr.bf16.mxu0 %v1594_v0 }
 0x22e   :  { %1223 = vmatpush3.bf16.msra.mxu0 %v1311_v13 }
 0x22f   :  { %1224 = vmatprep.subr.bf16.mxu0 %v1594_v0 }
 0x232   :  { %1225 = vmatpush3.bf16.msra.mxu0 %v1312_v34 }
 0x233   :  { %1226 = vmatprep.subr.bf16.mxu0 %v1594_v0  ;;  %v1326_v0 = vld [vmem:[#allocation14 + $0x30] ss:$8 sps:$4 sm:$0xff]  }
 0x236   :  { %1227 = vmatpush3.bf16.msra.mxu0 %v1313_v35 }
 0x2d9   :  { %v594_v21 = vpop.f32.mrf.mxu0 }
 0x2da   :  { %v595_v22 = vadd.f32 %v594_v21, %v473_v19 }
 0x2db   :  { %v596_v23 = vpop.f32.mrf.mxu0 }
 0x2dc   :  { %997 = vst [vmem:[#allocation17] sm:$0xff] %v595_v22  ;;  %v597_v24 = vadd.f32 %v596_v23, %v477_v20 }
 0x2dd   :  { %v598_v25 = vpop.f32.mrf.mxu0 }
 0x2de   :  { %v602_v26 = vmul.f32 0.5, %v597_v24  ;;  %998 = vst [vmem:[#allocation19] sm:$0xff] %v597_v24 }
 0x2df   :  { %v599_v27 = vpop.f32.mrf.mxu0 }
 0x2e0   :  { %v603_v28 = vmul.f32 1.442695, %v602_v26 }
 0x2e2   :  { %1338 = vpow2.f32 %v603_v28 }
 0x2ef   :  { %v1339_v30 = vpop.eup %1338 }
 0x2f0   :  { %v605_v31 = vmul.f32 %v1339_v30, %v601_v29 }
 0x2f2   :  { %v606_v32 = vadd.f32 %v605_v31, %v595_v22 }
 0x2f4   :  { %v607_v33 = vpack.c.bf16 %v606_v32, %v606_v32 }
 0x2f6   :  { %1209 = vmatmul.mubr.bf16.vlgmr.msra.gmra.mxu1 %v607_v33 }
 0x2f7   :  { %974 = vmatprep.mubr.bf16.mxu1 %v1596_v54  ;;  %943 = vmatpush1.bf16.msra.mxu1 %v1314_v36 }
 0x2f8   :  { %944 = vmatprep.subr.bf16.mxu1 %v1319_v38 }
 0x2fb   :  { %945 = vmatpush1.bf16.msra.mxu1 %v1317_v39 }
 0x2fc   :  { %946 = vmatprep.subr.bf16.mxu1 %v1322_v40 }
 0x2ff   :  { %947 = vmatpush1.bf16.msra.mxu1 %v1320_v41 }
 0x300   :  { %948 = vmatprep.subr.bf16.mxu1 %v1325_v42 }
 0x303   :  { %949 = vmatpush1.bf16.msra.mxu1 %v1323_v43 }
 0x304   :  { %950 = vmatprep.subr.bf16.mxu1 %v1328_v44 }
 0x307   :  { %951 = vmatpush1.bf16.msra.mxu1 %v1326_v0 }
 0x308   :  { %952 = vmatprep.subr.bf16.mxu1 %v1331_v45 }
 0x30b   :  { %953 = vmatpush1.bf16.msra.mxu1 %v1329_v46 }
 0x30c   :  { %954 = vmatprep.subr.bf16.mxu1 %v1334_v47 }
 0x30f   :  { %955 = vmatpush1.bf16.msra.mxu1 %v1332_v48 }
 0x310   :  { %956 = vmatprep.subr.bf16.mxu1 %v1337_v57 }
 0x313   :  { %957 = vmatpush1.bf16.msra.mxu1 %v1335_v58 }
 0x3b6   :  { %v713_v50 = vpop.f32.mrf.mxu1 }
 0x3b7   :  { %v714_v51 = vadd.f32 %v1087_v49, %v713_v50 }
 0x3b8   :  { %v1210_v52 = vpop.f32.mrf.mxu1 }
 0x3b9   :  { %v719_v53 = vmax.f32 %v714_v51, 0.0 }
 0x3ba   :  { %v716_v54 = vpop.f32.mrf.mxu1 }
 0x3bb   :  { %v720_v55 = vpack.c.bf16 %v719_v53, %v719_v53 }
 0x3bc   :  { %v1211_v56 = vpop.f32.mrf.mxu1 }
 0x3bd   :  { %1229 = vmatmul.mubr.bf16.vlgmr.msra.gmra.mxu0 %v720_v55 }
 0x47d   :  { %v826_v60 = vpop.f32.mrf.mxu0 }
 0x47e   :  { %v827_v61 = vadd.f32 %v1096_v59, %v826_v60 }
 0x47f   :  { %v1230_v62 = vpop.f32.mrf.mxu0 }
 0x480   :  { %v832_v63 = vmax.f32 %v827_v61, 0.0 }
 0x481   :  { %v829_v1 = vpop.f32.mrf.mxu0 }
 0x482   :  { %v833_v2 = vpack.c.bf16 %v832_v63, %v832_v63 }
 0x483   :  { %v1231_v3 = vpop.f32.mrf.mxu0 }
 0x484   :  { %975 = vmatmul.mubr.bf16.vlgmr.msra.gmra.mxu1 %v833_v2 }
 0x485   :  { %1519 = shalt.err (!%p1516_p2)
}
 0x486   :  { %1018 = dma.vmem_to_hbm [thread:$0]  %s1016_s1, 128, %s1807_s15, [#allocation18]  }
 0x487   :  { %s1598_s22 = smov [#allocation19]  }
 0x488   :  { %s1025_s23 = sshll.u32 %s1598_s22, 4  ;;  %s1026_s23 = int_to_ptr.vmem [resolvable:$true] %s1025_s23 }
 0x489   :  { %s1528_s24 = scalar_lea.vmem %s1026_s23, 128  ;;  %p1533_p4 = scmp.lt.s32.totalorder %s1026_s23, %s1026_s23 }
 0x48a   :  { %p1529_p3 = scmp.ne.s32.totalorder %s1026_s23, %s1528_s24  ;;  %p1534_p5 = scmp.lt.s32.totalorder %s1528_s24, %s1528_s24 }
 0x48c   :  { %p1535_p6 = por %p1534_p5, %p1533_p4 }
 0x48e   :  { %p1536_p7 = pnand %p1535_p6, %p1529_p3 }
 0x490   :  { %1539 = shalt.err (!%p1536_p7)
}
 0x491   :  { %1028 = dma.vmem_to_hbm [thread:$0]  %s1026_s23, 128, %s1808_s16, [#allocation18]   ;;  %v850_v4 = vld [vmem:[%s1805_s13] sm:$0x3] }
 0x492   :  { %v855_v5 = vrot.slane %v850_v4, %v472_v16  ;;  %v859_v6 = vrot.slane %v850_v4, %v476_v18  ;;  %s1599_s13 = smov [#allocation16]  }
 0x493   :  { %s1005_s15 = sshll.u32 %s1599_s13, 4  ;;  %s1006_s15 = int_to_ptr.vmem [resolvable:$true] %s1005_s15 }
 0x494   :  { %s1548_s16 = scalar_lea.vmem %s1006_s15, 256  ;;  %p1553_p9 = scmp.lt.s32.totalorder %s1006_s15, %s1006_s15 }
 0x495   :  { %p1549_p8 = scmp.ne.s32.totalorder %s1006_s15, %s1548_s16  ;;  %p1554_p10 = scmp.lt.s32.totalorder %s1548_s16, %s1548_s16 }
 0x497   :  { %p1555_p11 = por %p1554_p10, %p1553_p9 }
 0x499   :  { %p1556_p12 = pnand %p1555_p11, %p1549_p8 }
 0x544   :  { %v976_v7 = vpop.f32.mrf.mxu1 }
 0x545   :  { %v977_v8 = vadd.f32 %v976_v7, %v855_v5 }
 0x546   :  { %v978_v9 = vpop.f32.mrf.mxu1 }
 0x547   :  { %v1121_v10 = vmul.f32 -1.442695, %v977_v8  ;;  %v979_v11 = vadd.f32 %v978_v9, %v859_v6 }
 0x548   :  { %v980_v12 = vpop.f32.mrf.mxu1 }
 0x549   :  { %1340 = vpow2.f32 %v1121_v10  ;;  %v1122_v13 = vmul.f32 -1.442695, %v979_v11 }
 0x54a   :  { %v981_v14 = vpop.f32.mrf.mxu1 }
 0x54b   :  { %1342 = vpow2.f32 %v1122_v13 }
 0x556   :  { %v1341_v17 = vpop.eup %1340 }
 0x557   :  { %v989_v19 = vadd.f32 1.0, %v1341_v17 }
 0x558   :  { %v1343_v20 = vpop.eup %1342 }
 0x559   :  { %1344 = vrcp.f32 %v989_v19  ;;  %v990_v21 = vadd.f32 1.0, %v1343_v20 }
 0x55b   :  { %1346 = vrcp.f32 %v990_v21 }
 0x566   :  { %v1345_v15 = vpop.eup %1344 }
 0x567   :  { %995 = vst [vmem:[#allocation16] sm:$0xff] %v1345_v15 }
 0x568   :  { %v1347_v16 = vpop.eup %1346 }
 0x569   :  { %996 = vst [vmem:[#allocation16 + $0x8] sm:$0xff] %v1347_v16 }
 0x56a   :  { %1559 = shalt.err (!%p1556_p12)
}
 0x56b   :  { %1008 = dma.vmem_to_hbm [thread:$0]  %s1006_s15, 256, %s1806_s14, [#allocation4]  }
 0x56c   :  { %1578 = dma.done.wait [#allocation4], 256  }
 0x56d   :  { %1579 = vsyncadd [#allocation4], 4294967040 }
 0x56e   :  { %1580 = dma.done.wait [#allocation18], 256  }
 0x56f   :  { %1581 = vsyncadd [#allocation18], 4294967040 }
 0x570   :  { %1038 = vsyncpa [#allocation3], 1 }
 0x571   :  { %1039 = vsyncpa [#allocation6], 1 }
 0x572   :  { %1040 = vsyncpa [#allocation9], 1 }
 0x573   :  { %1041 = vsyncpa [#allocation12], 1 }
 0x574   :  { %1042 = vsyncpa [#allocation15], 1 }
 0x575   :  { %1043 = vsyncpa [#allocation4], 1 }
 0x576   :  { %1044 = vsyncpa [#allocation18], 1 }

</bundles_post_ra>
